<compile_context>
chip_gen: v6e
topology: v6e:2x2x1
jax: 0.10.0
libtpu: 0.0.40
codegen_flags: <defaults>
</compile_context>

<pallas_src>
import jax
import jax.numpy as jnp
from jax.experimental import pallas as pl
from jax.experimental.pallas import tpu as pltpu


# ---------------- kernel ----------------

def _bias_add_kernel(x_ref, b_ref, o_ref):
    # b_ref is either (1, TL) (row bias, broadcast over sublanes) or
    # (TR, 1) (column bias, broadcast over lanes).
    o_ref[...] = x_ref[...] + b_ref[...]


# ---------------- tiling helpers ----------------

_LANES = 128
_SUBLANES = 8
_BLOCK_BUDGET_BYTES = 6 << 20     # per x block (in + out double-buffered + bias fits <48 MiB)
_VMEM_LIMIT_BYTES = 48 << 20      # explicit scoped VMEM; safe on v5e/v6e (128 MiB) and v7x (64 MiB)
_MIN_SPLIT_BYTES = 4 << 20        # only force >=2 grid steps when there's real work
_PALLAS_MIN_ELEMS = _SUBLANES * _LANES  # below one vreg of work, plain JAX add wins


def _round_up(x, m):
    return ((x + m - 1) // m) * m


def _plan_tiles(n_rows, n_lanes, itemsize):
    """Pick (tile_rows, tile_lanes) for an (n_rows, n_lanes) elementwise add.

    - lane dim stays full (lane-dense stores) unless even an 8-sublane strip
      would exceed the block budget;
    - row dim grows until the block hits the budget;
    - if the whole array fits in one block but carries >= _MIN_SPLIT_BYTES of
      data, split one axis so the grid has >= 2 steps (v7x has 2 TensorCores).
    """
    total_bytes = n_rows * n_lanes * itemsize

    # Lane tile.
    min_rows = min(n_rows, _SUBLANES)
    tl = n_lanes
    if min_rows * n_lanes * itemsize > _BLOCK_BUDGET_BYTES:
        tl = max(_LANES,
                 (_BLOCK_BUDGET_BYTES // (min_rows * itemsize)) // _LANES * _LANES)

    # Row tile.
    tr = n_rows
    if n_rows * tl * itemsize > _BLOCK_BUDGET_BYTES:
        tr = max(_SUBLANES,
                 (_BLOCK_BUDGET_BYTES // (tl * itemsize)) // _SUBLANES * _SUBLANES)

    # Keep >=2 grid steps when there's enough work to amortize the extra step.
    if tr >= n_rows and tl >= n_lanes and total_bytes >= _MIN_SPLIT_BYTES:
        if n_rows >= 2 * _SUBLANES:
            tr = _round_up(pl.cdiv(n_rows, 2), _SUBLANES)
        elif n_lanes >= 2 * _LANES:
            tl = _round_up(pl.cdiv(n_lanes, 2), _LANES)
    return tr, tl


# ---------------- pallas_call wrapper ----------------

def _bias_add_2d_call(x2, bias2, *, bias_is_row, donate):
    """x2: (R, L). bias2: (1, L) if bias_is_row else (R, 1)."""
    R, L = x2.shape
    itemsize = x2.dtype.itemsize
    tr, tl = _plan_tiles(R, L, itemsize)
    grid = (pl.cdiv(R, tr), pl.cdiv(L, tl))

    if bias_is_row:
        b_spec = pl.BlockSpec((1, tl), lambda i, j: (0, j))
    else:
        b_spec = pl.BlockSpec((tr, 1), lambda i, j: (i, 0))

    return pl.pallas_call(
        _bias_add_kernel,
        out_shape=jax.ShapeDtypeStruct((R, L), x2.dtype),
        grid_spec=pl.GridSpec(
            grid=grid,
            in_specs=[
                pl.BlockSpec((tr, tl), lambda i, j: (i, j)),
                b_spec,
            ],
            out_specs=pl.BlockSpec((tr, tl), lambda i, j: (i, j)),
        ),
        compiler_params=pltpu.CompilerParams(
            dimension_semantics=("parallel", "parallel"),
            vmem_limit_bytes=_VMEM_LIMIT_BYTES,
        ),
        cost_estimate=pl.CostEstimate(
            flops=x2.size,
            transcendentals=0,
            bytes_accessed=2 * x2.size * itemsize + bias2.size * bias2.dtype.itemsize,
        ),
        input_output_aliases=({0: 0} if donate else {}),
    )(x2, bias2)


# ---------------- public wrappers ----------------

def add_bias_2d(x, bias, *, donate_x=False):
    """x: (B, C), bias: (C,) or (C, 1). Returns x + bias.T broadcast over rows."""
    B, C = x.shape
    bias_vec = bias.reshape(-1).astype(x.dtype)

    if x.size < _PALLAS_MIN_ELEMS:
        # Sub-vreg problem: fixed pallas_call overhead dominates, use plain add.
        return x + bias_vec[None, :]

    # Lane-dense repacking: fold k rows into the lane dim so the last dim is
    # exactly 128 (full-lane vst instead of C/128 masked lanes).
    if C < _LANES and _LANES % C == 0 and (B * C) % _LANES == 0:
        k = _LANES // C
        xp = x.reshape(B // k, _LANES)
        b_row = jnp.tile(bias_vec, k).reshape(1, _LANES)
        out = _bias_add_2d_call(xp, b_row, bias_is_row=True, donate=donate_x)
        return out.reshape(B, C)

    # TODO(synk): extend lane-dense repack to B*C not a multiple of 128 via a
    # padded tail block; partial-lane stores here are handled by Pallas masking.
    b_row = bias_vec.reshape(1, C)
    return _bias_add_2d_call(x, b_row, bias_is_row=True, donate=donate_x)


def add_bias_4d(x, bias, *, donate_x=False):
    """x: (N, C, H, W) NCHW, bias: (C,) or (C, 1). Per-channel broadcast add."""
    N, C, H, W = x.shape
    bias_vec = bias.reshape(-1).astype(x.dtype)

    if x.size < _PALLAS_MIN_ELEMS:
        return x + bias_vec[None, :, None, None]

    # Flatten to (N*C, H*W): hundreds/thousands of sublanes per block and a
    # lane-dense spatial axis; bias becomes a per-row column of length N*C
    # (row index = n*C + c in row-major order -> tile(bias, N)).
    HW = H * W
    x2 = x.reshape(N * C, HW)
    b_col = jnp.tile(bias_vec, N).reshape(N * C, 1)
    # TODO(synk): if H*W < 128 the last dim is below a lane and stores are
    # masked; a lane-fold would need per-block bias gathers, not worth it here.
    out = _bias_add_2d_call(x2, b_col, bias_is_row=False, donate=donate_x)
    return out.reshape(N, C, H, W)


def add_bias(x, bias, *, donate_x=False):
    """Mirror of AddBias.forward."""
    if x.ndim == 2:
        return add_bias_2d(x, bias, donate_x=donate_x)
    if x.ndim == 4:
        return add_bias_4d(x, bias, donate_x=donate_x)
    # PyTorch's else-branch (.view(1,-1,1,1)) only broadcasts correctly for 4D
    # inputs anyway; be explicit rather than silently mis-broadcast.
    raise ValueError(f"AddBias expects 2D or 4D input, got ndim={x.ndim}")


# ---------------- demo / check ----------------

if __name__ == "__main__":
    key = jax.random.PRNGKey(0)
    k_b, k_x2, k_x2b, k_b8, k_x4, k_x4b = jax.random.split(key, 6)

    C = 4  # action-dim / channel count from the test

    # Deterministic parameter init (module's __init__ does bias.unsqueeze(1))
    bias_vec = jax.random.normal(k_b, (C,), dtype=jnp.float32)
    bias_param = bias_vec[:, None]  # (C, 1), same as nn.Parameter(bias.unsqueeze(1))

    # 2D path, tiny shape from the test (sub-vreg -> plain-JAX bypass)
    x2 = jax.random.normal(k_x2, (2, C), dtype=jnp.float32)
    out2 = jax.block_until_ready(add_bias(x2, bias_param))
    ref2 = x2 + bias_vec[None, :]
    assert jnp.allclose(out2, ref2, atol=1e-6), "2D (small) mismatch"

    # 2D path exercising the lane-dense repacked Pallas kernel
    x2b = jax.random.normal(k_x2b, (256, C), dtype=jnp.float32)
    out2b = jax.block_until_ready(add_bias(x2b, bias_param))
    ref2b = x2b + bias_vec[None, :]
    assert jnp.allclose(out2b, ref2b, atol=1e-6), "2D (packed) mismatch"

    # 4D path, NCHW shape from the test (flattened (N*C, H*W) Pallas kernel)
    x4 = jax.random.normal(k_x4, (2, C, 16, 16), dtype=jnp.float32)
    out4 = jax.block_until_ready(add_bias(x4, bias_param))
    ref4 = x4 + bias_vec[None, :, None, None]
    assert jnp.allclose(out4, ref4, atol=1e-6), "4D (small) mismatch"

    # 4D path with more channels / spatial (still one or two big blocks)
    C8 = 8
    bias8 = jax.random.normal(k_b8, (C8,), dtype=jnp.float32)
    x4b = jax.random.normal(k_x4b, (2, C8, 64, 64), dtype=jnp.float32)
    out4b = jax.block_until_ready(add_bias(x4b, bias8[:, None]))
    ref4b = x4b + bias8[None, :, None, None]
    assert jnp.allclose(out4b, ref4b, atol=1e-6), "4D (wide) mismatch"

    print("KERNEL_OK")
</pallas_src>

<mosaic_0001>
module attributes {stable_mosaic.version = 11 : i64} {
  func.func @_bias_add_kernel(%arg0: i32, %arg1: i32, %arg2: memref<8x128xf32, #tpu.memory_space<vmem>>, %arg3: memref<1x128xf32, #tpu.memory_space<vmem>>, %arg4: memref<8x128xf32, #tpu.memory_space<vmem>>) attributes {dimension_semantics = [#tpu.dimension_semantics<parallel>, #tpu.dimension_semantics<parallel>], iteration_bounds = array<i64: 1, 1>, scalar_prefetch = 0 : i64, scratch_operands = 0 : i64, tpu.core_type = #tpu.core_type<tc>, window_params = [{transform_indices = @transform_0, window_bounds = array<i64: 8, 128>}, {transform_indices = @transform_1, window_bounds = array<i64: 1, 128>}, {transform_indices = @transform_2, window_bounds = array<i64: 8, 128>}]} {
    %c0 = arith.constant 0 : index
    %c0_0 = arith.constant 0 : index
    %0 = vector.load %arg2[%c0, %c0_0] : memref<8x128xf32, #tpu.memory_space<vmem>>, vector<8x128xf32>
    %c0_1 = arith.constant 0 : index
    %c0_2 = arith.constant 0 : index
    %1 = vector.load %arg3[%c0_1, %c0_2] : memref<1x128xf32, #tpu.memory_space<vmem>>, vector<1x128xf32>
    %2 = vector.broadcast %1 : vector<1x128xf32> to vector<8x128xf32>
    %3 = arith.addf %0, %2 : vector<8x128xf32>
    %c0_3 = arith.constant 0 : index
    %c0_4 = arith.constant 0 : index
    %4 = vector.load %arg4[%c0_3, %c0_4] : memref<8x128xf32, #tpu.memory_space<vmem>>, vector<8x128xf32>
    tpu.vector_store %arg4[%c0_3, %c0_4], %3 {strides = array<i32>} : memref<8x128xf32, #tpu.memory_space<vmem>>, vector<8x128xf32>,
    return
  }
  func.func @transform_0(%arg0: i32, %arg1: i32) -> (i32, i32) {
    %c0_i32 = arith.constant 0 : i32
    return %arg0, %arg1 : i32, i32
  }
  func.func @transform_1(%arg0: i32, %arg1: i32) -> (i32, i32) {
    %c0_i32 = arith.constant 0 : i32
    %c0_i32_0 = arith.constant 0 : i32
    return %c0_i32, %arg1 : i32, i32
  }
  func.func @transform_2(%arg0: i32, %arg1: i32) -> (i32, i32) {
    %c0_i32 = arith.constant 0 : i32
    return %arg0, %arg1 : i32, i32
  }
}

</mosaic_0001>

<bundles_post_ra>
// kernel: tpu_custom_call.1
= control target key start
LH: loop header
LB: loop body
LE: loop exit
PB: predicated region body
PF: predicated region fallthrough
CT: control target
= control target key end

     0   :  { %7 = vsyncpa [#allocation3], 0  ;;  %s122_s0 = inlined_call_operand.hbm [shape: f32[8,128], index: 0, kind: input, shape index: {}]   ;;  %s123_s1 = inlined_call_operand.vmem [shape: f32[1,128], index: 1, kind: input, shape index: {}]   ;;  %s124_s2 = inlined_call_operand.hbm [shape: f32[8,128], index: 2, kind: output, shape index: {}]  }
   0x1   :  { %8 = vsyncpa [#allocation4], 0  ;;  %s96_s9 = smov [#allocation2]  }
   0x2   :  { %s15_s10 = sshll.u32 %s96_s9, 4  ;;  %s16_s10 = int_to_ptr.vmem [resolvable:$true] %s15_s10 }
   0x3   :  { %s60_s11 = scalar_lea.vmem %s16_s10, 128  ;;  %p65_p1 = scmp.lt.s32.totalorder %s16_s10, %s16_s10 }
   0x4   :  { %p61_p0 = scmp.ne.s32.totalorder %s16_s10, %s60_s11  ;;  %p66_p2 = scmp.lt.s32.totalorder %s60_s11, %s60_s11 }
   0x6   :  { %p67_p3 = por %p66_p2, %p65_p1 }
   0x8   :  { %p68_p4 = pnand %p67_p3, %p61_p0 }
   0xa   :  { %71 = shalt.err (!%p68_p4)
}
   0xb   :  { %18 = dma.hbm_to_vmem [thread:$0]  %s122_s0, 128, %s16_s10, [#allocation3]  }
   0xc   :  { %92 = dma.done.wait [#allocation3], 128  }
   0xd   :  { %93 = vsyncadd [#allocation3], 4294967168  ;;  %s97_s14 = smov [#allocation5]   ;;  %v24_v0 = vld [vmem:[#allocation2] sm:$0xff] }
   0xe   :  { %s40_s15 = sshll.u32 %s97_s14, 4  ;;  %v49_v1 = vld [vmem:[%s123_s1] ss:$0 sm:$0xff]  ;;  %s41_s15 = int_to_ptr.vmem [resolvable:$true] %s40_s15 }
   0xf   :  { %v32_v2 = vadd.f32 %v49_v1, %v24_v0  ;;  %s72_s18 = scalar_lea.vmem %s41_s15, 128  ;;  %p77_p6 = scmp.lt.s32.totalorder %s41_s15, %s41_s15 }
  0x10   :  { %p73_p5 = scmp.ne.s32.totalorder %s41_s15, %s72_s18  ;;  %p78_p7 = scmp.lt.s32.totalorder %s72_s18, %s72_s18 }
  0x11   :  { %33 = vst [vmem:[#allocation5] sm:$0xff] %v32_v2 }
  0x12   :  { %p79_p8 = por %p78_p7, %p77_p6 }
  0x14   :  { %p80_p9 = pnand %p79_p8, %p73_p5 }
  0x16   :  { %83 = shalt.err (!%p80_p9)
}
  0x17   :  { %43 = dma.vmem_to_hbm [thread:$0]  %s41_s15, 128, %s124_s2, [#allocation4]  }
  0x18   :  { %94 = dma.done.wait [#allocation4], 128  }
  0x19   :  { %95 = vsyncadd [#allocation4], 4294967168 }
  0x1a   :  { %47 = vsyncpa [#allocation3], 1 }
  0x1b   :  { %48 = vsyncpa [#allocation4], 1 }

</bundles_post_ra>
